<compile_context>
chip_gen: v5e
topology: v5e:2x2
jax: 0.10.0
libtpu: 0.0.40
codegen_flags: <defaults>
</compile_context>

<pallas_src>
import functools

import jax
import jax.numpy as jnp
from jax.experimental import pallas as pl
from jax.experimental.pallas import tpu as pltpu


def lstm_linear_kernel(x_ref, wih_ref, whh_ref, b_ref, wlin_ref, blin_ref,
                       y_ref, hs_ref, *, B, T):
    """x_ref: (T*B, Dp) time-major rows. Gate columns ordered [i, f, o, g]."""
    H = whh_ref.shape[0]

    # ---- Batched input projection for all timesteps (one MXU matmul). ----
    # (T*B, Dp) @ (Dp, 4H) + bias; bias (b_ih + b_hh) pre-combined in wrapper.
    pre = (jnp.dot(x_ref[...], wih_ref[...], preferred_element_type=jnp.float32)
           + b_ref[...])                                  # (T*B, 4H), time-major

    whh = whh_ref[...]                                    # (H, 4H) loop-invariant

    # ---- Recurrence over T (static unroll; only h @ W_hh in the loop). ----
    h = jnp.zeros((B, H), jnp.float32)
    c = jnp.zeros((B, H), jnp.float32)
    for t in range(T):                                    # T known at trace time
        # Static, tile-aligned 2-sublane slice (no cross-sublane shuffle).
        gates = pre[t * B:(t + 1) * B, :] + jnp.dot(
            h, whh, preferred_element_type=jnp.float32)   # (B, 4H)
        # Gate order [i, f, o, g]: one contiguous sigmoid (as a single tanh
        # EUP op) over 3H columns, one tanh over the last H columns.
        sig = 0.5 * jnp.tanh(0.5 * gates[:, :3 * H]) + 0.5
        g_g = jnp.tanh(gates[:, 3 * H:])
        i_g = sig[:, 0 * H:1 * H]
        f_g = sig[:, 1 * H:2 * H]
        o_g = sig[:, 2 * H:3 * H]
        c = f_g * c + i_g * g_g
        h = o_g * jnp.tanh(c)
        hs_ref[t * B:(t + 1) * B, :] = h                  # time-major VMEM store

    # ---- Batched output Linear(H, 2) + single store. ----
    y_ref[...] = (jnp.dot(hs_ref[...], wlin_ref[...],
                          preferred_element_type=jnp.float32)
                  + blin_ref[...])                        # (T*B, 2)


def prepare_params(params, pad_d_to=32):
    """One-time transform of PyTorch-layout params for the kernel:
    gate blocks reordered [i,f,g,o] -> [i,f,o,g], biases combined, weights
    transposed for MXU (x @ W^T form), contraction dim zero-padded to 32."""
    wih, whh, bih, bhh, wlin, blin = params
    H = whh.shape[1]
    D = wih.shape[1]

    def reorder(w):   # row blocks [i, f, g, o] -> [i, f, o, g]
        return jnp.concatenate([w[:2 * H], w[3 * H:4 * H], w[2 * H:3 * H]],
                               axis=0)

    wih_p = reorder(wih)                    # (4H, D)
    whh_p = reorder(whh)                    # (4H, H)
    b_p = reorder((bih + bhh)[:, None])[:, 0]   # (4H,)

    wih_t = jnp.pad(wih_p.T, ((0, pad_d_to - D), (0, 0)))   # (Dp, 4H), zero rows
    whh_t = whh_p.T                                          # (H, 4H)
    return (wih_t, whh_t, b_p.reshape(1, 4 * H), wlin.T, blin.reshape(1, 2))


def sign_detection_rnn_forward(x, prepped):
    """x: (B, T, D) float32 (batch_first). Returns (B, T, 2) float32."""
    wih_t, whh_t, b, wlin_t, blin = prepped
    B, T, D = x.shape
    Dp = wih_t.shape[0]
    H = whh_t.shape[0]

    # Layout plumbing only (no compute hoisted): batch-first -> time-major rows
    # [t0b0, t0b1, t1b0, ...], zero-pad contraction dim 25 -> 32.
    x_tm = jnp.transpose(x, (1, 0, 2)).reshape(T * B, D)
    x_tm = jnp.pad(x_tm, ((0, 0), (0, Dp - D)))

    # Single grid-less invocation: everything VMEM-resident (~100 KB total).
    y_tm = pl.pallas_call(
        functools.partial(lstm_linear_kernel, B=B, T=T),
        out_shape=jax.ShapeDtypeStruct((T * B, 2), jnp.float32),
        scratch_shapes=[pltpu.VMEM((T * B, H), jnp.float32)],
    )(x_tm, wih_t, whh_t, b, wlin_t, blin)

    return jnp.transpose(y_tm.reshape(T, B, 2), (1, 0, 2))   # (B, T, 2)


def ref_forward(x, params):
    """Pure-JAX reference in PyTorch layout/gate order (i, f, g, o), eval mode."""
    wih, whh, bih, bhh, wlin, blin = params
    B, T, D = x.shape
    H = whh.shape[1]

    def step(carry, x_t):
        h, c = carry
        gates = x_t @ wih.T + h @ whh.T + bih + bhh
        i_g = jax.nn.sigmoid(gates[:, :H])
        f_g = jax.nn.sigmoid(gates[:, H:2 * H])
        g_g = jnp.tanh(gates[:, 2 * H:3 * H])
        o_g = jax.nn.sigmoid(gates[:, 3 * H:])
        c = f_g * c + i_g * g_g
        h = o_g * jnp.tanh(c)
        y = h @ wlin.T + blin
        return (h, c), y

    init = (jnp.zeros((B, H), jnp.float32), jnp.zeros((B, H), jnp.float32))
    _, ys = jax.lax.scan(step, init, jnp.transpose(x, (1, 0, 2)))
    return jnp.transpose(ys, (1, 0, 2))


def make_params(key, input_dim=25, hidden_size=64):
    """Params in native PyTorch shapes / gate order (i, f, g, o)."""
    D, H = input_dim, hidden_size
    ks = jax.random.split(key, 6)
    scale = 1.0 / jnp.sqrt(H)
    wih = jax.random.uniform(ks[0], (4 * H, D), jnp.float32, -scale, scale)
    whh = jax.random.uniform(ks[1], (4 * H, H), jnp.float32, -scale, scale)
    bih = jax.random.uniform(ks[2], (4 * H,), jnp.float32, -scale, scale)
    bhh = jax.random.uniform(ks[3], (4 * H,), jnp.float32, -scale, scale)
    wlin = jax.random.uniform(ks[4], (2, H), jnp.float32, -scale, scale)
    blin = jax.random.uniform(ks[5], (2,), jnp.float32, -scale, scale)
    return wih, whh, bih, bhh, wlin, blin


if __name__ == "__main__":
    key = jax.random.PRNGKey(0)
    k_x, k_p = jax.random.split(key)

    B, T, D, H = 2, 8, 25, 64
    x = jax.random.normal(k_x, (B, T, D), jnp.float32)
    params = make_params(k_p, input_dim=D, hidden_size=H)
    prepped = prepare_params(params)

    y = jax.block_until_ready(sign_detection_rnn_forward(x, prepped))
    y_ref = jax.block_until_ready(ref_forward(x, params))

    assert y.shape == (B, T, 2), y.shape
    # Tolerance allows for tanh-form sigmoid vs. lax.logistic in the reference.
    assert jnp.allclose(y, y_ref, atol=2e-5, rtol=2e-5), \
        float(jnp.max(jnp.abs(y - y_ref)))
    print("KERNEL_OK")
</pallas_src>

<mosaic_0001>
module attributes {stable_mosaic.version = 11 : i64} {
  func.func @lstm_linear_kernel(%arg0: memref<16x32xf32, #tpu.memory_space<vmem>>, %arg1: memref<32x256xf32, #tpu.memory_space<vmem>>, %arg2: memref<64x256xf32, #tpu.memory_space<vmem>>, %arg3: memref<1x256xf32, #tpu.memory_space<vmem>>, %arg4: memref<64x2xf32, #tpu.memory_space<vmem>>, %arg5: memref<1x2xf32, #tpu.memory_space<vmem>>, %arg6: memref<16x2xf32, #tpu.memory_space<vmem>>, %arg7: memref<16x64xf32, #tpu.memory_space<vmem>>) attributes {dimension_semantics = [], scalar_prefetch = 0 : i64, scratch_operands = 1 : i64, tpu.core_type = #tpu.core_type<tc>} {
    %c0 = arith.constant 0 : index
    %c0_0 = arith.constant 0 : index
    %0 = vector.load %arg0[%c0, %c0_0] : memref<16x32xf32, #tpu.memory_space<vmem>>, vector<16x32xf32>
    %c0_1 = arith.constant 0 : index
    %c0_2 = arith.constant 0 : index
    %1 = vector.load %arg1[%c0_1, %c0_2] : memref<32x256xf32, #tpu.memory_space<vmem>>, vector<32x256xf32>
    %cst = arith.constant dense<0.000000e+00> : vector<16x256xf32>
    %2 = tpu.matmul %0, %1, %cst {dimension_numbers = #tpu.dot_dimension_numbers<[1], [0], [0], [1], [0, 0, 1, 1], [], []>} : vector<16x32xf32>, vector<32x256xf32>, vector<16x256xf32> -> vector<16x256xf32>
    %c0_3 = arith.constant 0 : index
    %c0_4 = arith.constant 0 : index
    %3 = vector.load %arg3[%c0_3, %c0_4] : memref<1x256xf32, #tpu.memory_space<vmem>>, vector<1x256xf32>
    %4 = vector.broadcast %3 : vector<1x256xf32> to vector<16x256xf32>
    %5 = arith.addf %2, %4 : vector<16x256xf32>
    %c0_5 = arith.constant 0 : index
    %c0_6 = arith.constant 0 : index
    %6 = vector.load %arg2[%c0_5, %c0_6] : memref<64x256xf32, #tpu.memory_space<vmem>>, vector<64x256xf32>
    %cst_7 = arith.constant 0.000000e+00 : f32
    %7 = vector.broadcast %cst_7 : f32 to vector<2x64xf32>
    %cst_8 = arith.constant 0.000000e+00 : f32
    %8 = vector.broadcast %cst_8 : f32 to vector<2x64xf32>
    %9 = vector.extract_strided_slice %5 {offsets = [0, 0], sizes = [2, 256], strides = [1, 1]} : vector<16x256xf32> to vector<2x256xf32>
    %cst_9 = arith.constant dense<0.000000e+00> : vector<2x256xf32>
    %10 = tpu.matmul %7, %6, %cst_9 {dimension_numbers = #tpu.dot_dimension_numbers<[1], [0], [0], [1], [0, 0, 1, 1], [], []>} : vector<2x64xf32>, vector<64x256xf32>, vector<2x256xf32> -> vector<2x256xf32>
    %11 = arith.addf %9, %10 : vector<2x256xf32>
    %12 = vector.extract_strided_slice %11 {offsets = [0, 0], sizes = [2, 192], strides = [1, 1]} : vector<2x256xf32> to vector<2x192xf32>
    %cst_10 = arith.constant 5.000000e-01 : f32
    %13 = vector.broadcast %cst_10 : f32 to vector<2x192xf32>
    %14 = arith.mulf %13, %12 : vector<2x192xf32>
    %15 = math.tanh %14 : vector<2x192xf32>
    %cst_11 = arith.constant 5.000000e-01 : f32
    %16 = vector.broadcast %cst_11 : f32 to vector<2x192xf32>
    %17 = arith.mulf %16, %15 : vector<2x192xf32>
    %cst_12 = arith.constant 5.000000e-01 : f32
    %18 = vector.broadcast %cst_12 : f32 to vector<2x192xf32>
    %19 = arith.addf %17, %18 : vector<2x192xf32>
    %20 = vector.extract_strided_slice %11 {offsets = [0, 192], sizes = [2, 64], strides = [1, 1]} : vector<2x256xf32> to vector<2x64xf32>
    %21 = math.tanh %20 : vector<2x64xf32>
    %22 = vector.extract_strided_slice %19 {offsets = [0, 0], sizes = [2, 64], strides = [1, 1]} : vector<2x192xf32> to vector<2x64xf32>
    %23 = vector.extract_strided_slice %19 {offsets = [0, 64], sizes = [2, 64], strides = [1, 1]} : vector<2x192xf32> to vector<2x64xf32>
    %24 = vector.extract_strided_slice %19 {offsets = [0, 128], sizes = [2, 64], strides = [1, 1]} : vector<2x192xf32> to vector<2x64xf32>
    %25 = arith.mulf %23, %8 : vector<2x64xf32>
    %26 = arith.mulf %22, %21 : vector<2x64xf32>
    %27 = arith.addf %25, %26 : vector<2x64xf32>
    %28 = math.tanh %27 : vector<2x64xf32>
    %29 = arith.mulf %24, %28 : vector<2x64xf32>
    %c0_13 = arith.constant 0 : index
    %c0_14 = arith.constant 0 : index
    %30 = vector.load %arg7[%c0_13, %c0_14] : memref<16x64xf32, #tpu.memory_space<vmem>>, vector<2x64xf32>
    tpu.vector_store %arg7[%c0_13, %c0_14], %29 {strides = array<i32>} : memref<16x64xf32, #tpu.memory_space<vmem>>, vector<2x64xf32>,
    %31 = vector.extract_strided_slice %5 {offsets = [2, 0], sizes = [2, 256], strides = [1, 1]} : vector<16x256xf32> to vector<2x256xf32>
    %cst_15 = arith.constant dense<0.000000e+00> : vector<2x256xf32>
    %32 = tpu.matmul %29, %6, %cst_15 {dimension_numbers = #tpu.dot_dimension_numbers<[1], [0], [0], [1], [0, 0, 1, 1], [], []>} : vector<2x64xf32>, vector<64x256xf32>, vector<2x256xf32> -> vector<2x256xf32>
    %33 = arith.addf %31, %32 : vector<2x256xf32>
    %34 = vector.extract_strided_slice %33 {offsets = [0, 0], sizes = [2, 192], strides = [1, 1]} : vector<2x256xf32> to vector<2x192xf32>
    %cst_16 = arith.constant 5.000000e-01 : f32
    %35 = vector.broadcast %cst_16 : f32 to vector<2x192xf32>
    %36 = arith.mulf %35, %34 : vector<2x192xf32>
    %37 = math.tanh %36 : vector<2x192xf32>
    %cst_17 = arith.constant 5.000000e-01 : f32
    %38 = vector.broadcast %cst_17 : f32 to vector<2x192xf32>
    %39 = arith.mulf %38, %37 : vector<2x192xf32>
    %cst_18 = arith.constant 5.000000e-01 : f32
    %40 = vector.broadcast %cst_18 : f32 to vector<2x192xf32>
    %41 = arith.addf %39, %40 : vector<2x192xf32>
    %42 = vector.extract_strided_slice %33 {offsets = [0, 192], sizes = [2, 64], strides = [1, 1]} : vector<2x256xf32> to vector<2x64xf32>
    %43 = math.tanh %42 : vector<2x64xf32>
    %44 = vector.extract_strided_slice %41 {offsets = [0, 0], sizes = [2, 64], strides = [1, 1]} : vector<2x192xf32> to vector<2x64xf32>
    %45 = vector.extract_strided_slice %41 {offsets = [0, 64], sizes = [2, 64], strides = [1, 1]} : vector<2x192xf32> to vector<2x64xf32>
    %46 = vector.extract_strided_slice %41 {offsets = [0, 128], sizes = [2, 64], strides = [1, 1]} : vector<2x192xf32> to vector<2x64xf32>
    %47 = arith.mulf %45, %27 : vector<2x64xf32>
    %48 = arith.mulf %44, %43 : vector<2x64xf32>
    %49 = arith.addf %47, %48 : vector<2x64xf32>
    %50 = math.tanh %49 : vector<2x64xf32>
    %51 = arith.mulf %46, %50 : vector<2x64xf32>
    %c2 = arith.constant 2 : index
    %c0_19 = arith.constant 0 : index
    %52 = vector.load %arg7[%c2, %c0_19] : memref<16x64xf32, #tpu.memory_space<vmem>>, vector<2x64xf32>
    tpu.vector_store %arg7[%c2, %c0_19], %51 {strides = array<i32>} : memref<16x64xf32, #tpu.memory_space<vmem>>, vector<2x64xf32>,
    %53 = vector.extract_strided_slice %5 {offsets = [4, 0], sizes = [2, 256], strides = [1, 1]} : vector<16x256xf32> to vector<2x256xf32>
    %cst_20 = arith.constant dense<0.000000e+00> : vector<2x256xf32>
    %54 = tpu.matmul %51, %6, %cst_20 {dimension_numbers = #tpu.dot_dimension_numbers<[1], [0], [0], [1], [0, 0, 1, 1], [], []>} : vector<2x64xf32>, vector<64x256xf32>, vector<2x256xf32> -> vector<2x256xf32>
    %55 = arith.addf %53, %54 : vector<2x256xf32>
    %56 = vector.extract_strided_slice %55 {offsets = [0, 0], sizes = [2, 192], strides = [1, 1]} : vector<2x256xf32> to vector<2x192xf32>
    %cst_21 = arith.constant 5.000000e-01 : f32
    %57 = vector.broadcast %cst_21 : f32 to vector<2x192xf32>
    %58 = arith.mulf %57, %56 : vector<2x192xf32>
    %59 = math.tanh %58 : vector<2x192xf32>
    %cst_22 = arith.constant 5.000000e-01 : f32
    %60 = vector.broadcast %cst_22 : f32 to vector<2x192xf32>
    %61 = arith.mulf %60, %59 : vector<2x192xf32>
    %cst_23 = arith.constant 5.000000e-01 : f32
    %62 = vector.broadcast %cst_23 : f32 to vector<2x192xf32>
    %63 = arith.addf %61, %62 : vector<2x192xf32>
    %64 = vector.extract_strided_slice %55 {offsets = [0, 192], sizes = [2, 64], strides = [1, 1]} : vector<2x256xf32> to vector<2x64xf32>
    %65 = math.tanh %64 : vector<2x64xf32>
    %66 = vector.extract_strided_slice %63 {offsets = [0, 0], sizes = [2, 64], strides = [1, 1]} : vector<2x192xf32> to vector<2x64xf32>
    %67 = vector.extract_strided_slice %63 {offsets = [0, 64], sizes = [2, 64], strides = [1, 1]} : vector<2x192xf32> to vector<2x64xf32>
    %68 = vector.extract_strided_slice %63 {offsets = [0, 128], sizes = [2, 64], strides = [1, 1]} : vector<2x192xf32> to vector<2x64xf32>
    %69 = arith.mulf %67, %49 : vector<2x64xf32>
    %70 = arith.mulf %66, %65 : vector<2x64xf32>
    %71 = arith.addf %69, %70 : vector<2x64xf32>
    %72 = math.tanh %71 : vector<2x64xf32>
    %73 = arith.mulf %68, %72 : vector<2x64xf32>
    %c4 = arith.constant 4 : index
    %c0_24 = arith.constant 0 : index
    %74 = vector.load %arg7[%c4, %c0_24] : memref<16x64xf32, #tpu.memory_space<vmem>>, vector<2x64xf32>
    tpu.vector_store %arg7[%c4, %c0_24], %73 {strides = array<i32>} : memref<16x64xf32, #tpu.memory_space<vmem>>, vector<2x64xf32>,
    %75 = vector.extract_strided_slice %5 {offsets = [6, 0], sizes = [2, 256], strides = [1, 1]} : vector<16x256xf32> to vector<2x256xf32>
    %cst_25 = arith.constant dense<0.000000e+00> : vector<2x256xf32>
    %76 = tpu.matmul %73, %6, %cst_25 {dimension_numbers = #tpu.dot_dimension_numbers<[1], [0], [0], [1], [0, 0, 1, 1], [], []>} : vector<2x64xf32>, vector<64x256xf32>, vector<2x256xf32> -> vector<2x256xf32>
    %77 = arith.addf %75, %76 : vector<2x256xf32>
    %78 = vector.extract_strided_slice %77 {offsets = [0, 0], sizes = [2, 192], strides = [1, 1]} : vector<2x256xf32> to vector<2x192xf32>
    %cst_26 = arith.constant 5.000000e-01 : f32
    %79 = vector.broadcast %cst_26 : f32 to vector<2x192xf32>
    %80 = arith.mulf %79, %78 : vector<2x192xf32>
    %81 = math.tanh %80 : vector<2x192xf32>
    %cst_27 = arith.constant 5.000000e-01 : f32
    %82 = vector.broadcast %cst_27 : f32 to vector<2x192xf32>
    %83 = arith.mulf %82, %81 : vector<2x192xf32>
    %cst_28 = arith.constant 5.000000e-01 : f32
    %84 = vector.broadcast %cst_28 : f32 to vector<2x192xf32>
    %85 = arith.addf %83, %84 : vector<2x192xf32>
    %86 = vector.extract_strided_slice %77 {offsets = [0, 192], sizes = [2, 64], strides = [1, 1]} : vector<2x256xf32> to vector<2x64xf32>
    %87 = math.tanh %86 : vector<2x64xf32>
    %88 = vector.extract_strided_slice %85 {offsets = [0, 0], sizes = [2, 64], strides = [1, 1]} : vector<2x192xf32> to vector<2x64xf32>
    %89 = vector.extract_strided_slice %85 {offsets = [0, 64], sizes = [2, 64], strides = [1, 1]} : vector<2x192xf32> to vector<2x64xf32>
    %90 = vector.extract_strided_slice %85 {offsets = [0, 128], sizes = [2, 64], strides = [1, 1]} : vector<2x192xf32> to vector<2x64xf32>
    %91 = arith.mulf %89, %71 : vector<2x64xf32>
    %92 = arith.mulf %88, %87 : vector<2x64xf32>
    %93 = arith.addf %91, %92 : vector<2x64xf32>
    %94 = math.tanh %93 : vector<2x64xf32>
    %95 = arith.mulf %90, %94 : vector<2x64xf32>
    %c6 = arith.constant 6 : index
    %c0_29 = arith.constant 0 : index
    %96 = vector.load %arg7[%c6, %c0_29] : memref<16x64xf32, #tpu.memory_space<vmem>>, vector<2x64xf32>
    tpu.vector_store %arg7[%c6, %c0_29], %95 {strides = array<i32>} : memref<16x64xf32, #tpu.memory_space<vmem>>, vector<2x64xf32>,
    %97 = vector.extract_strided_slice %5 {offsets = [8, 0], sizes = [2, 256], strides = [1, 1]} : vector<16x256xf32> to vector<2x256xf32>
    %cst_30 = arith.constant dense<0.000000e+00> : vector<2x256xf32>
    %98 = tpu.matmul %95, %6, %cst_30 {dimension_numbers = #tpu.dot_dimension_numbers<[1], [0], [0], [1], [0, 0, 1, 1], [], []>} : vector<2x64xf32>, vector<64x256xf32>, vector<2x256xf32> -> vector<2x256xf32>
    %99 = arith.addf %97, %98 : vector<2x256xf32>
    %100 = vector.extract_strided_slice %99 {offsets = [0, 0], sizes = [2, 192], strides = [1, 1]} : vector<2x256xf32> to vector<2x192xf32>
    %cst_31 = arith.constant 5.000000e-01 : f32
    %101 = vector.broadcast %cst_31 : f32 to vector<2x192xf32>
    %102 = arith.mulf %101, %100 : vector<2x192xf32>
    %103 = math.tanh %102 : vector<2x192xf32>
    %cst_32 = arith.constant 5.000000e-01 : f32
    %104 = vector.broadcast %cst_32 : f32 to vector<2x192xf32>
    %105 = arith.mulf %104, %103 : vector<2x192xf32>
    %cst_33 = arith.constant 5.000000e-01 : f32
    %106 = vector.broadcast %cst_33 : f32 to vector<2x192xf32>
    %107 = arith.addf %105, %106 : vector<2x192xf32>
    %108 = vector.extract_strided_slice %99 {offsets = [0, 192], sizes = [2, 64], strides = [1, 1]} : vector<2x256xf32> to vector<2x64xf32>
    %109 = math.tanh %108 : vector<2x64xf32>
    %110 = vector.extract_strided_slice %107 {offsets = [0, 0], sizes = [2, 64], strides = [1, 1]} : vector<2x192xf32> to vector<2x64xf32>
    %111 = vector.extract_strided_slice %107 {offsets = [0, 64], sizes = [2, 64], strides = [1, 1]} : vector<2x192xf32> to vector<2x64xf32>
    %112 = vector.extract_strided_slice %107 {offsets = [0, 128], sizes = [2, 64], strides = [1, 1]} : vector<2x192xf32> to vector<2x64xf32>
    %113 = arith.mulf %111, %93 : vector<2x64xf32>
    %114 = arith.mulf %110, %109 : vector<2x64xf32>
    %115 = arith.addf %113, %114 : vector<2x64xf32>
    %116 = math.tanh %115 : vector<2x64xf32>
    %117 = arith.mulf %112, %116 : vector<2x64xf32>
    %c8 = arith.constant 8 : index
    %c0_34 = arith.constant 0 : index
    %118 = vector.load %arg7[%c8, %c0_34] : memref<16x64xf32, #tpu.memory_space<vmem>>, vector<2x64xf32>
    tpu.vector_store %arg7[%c8, %c0_34], %117 {strides = array<i32>} : memref<16x64xf32, #tpu.memory_space<vmem>>, vector<2x64xf32>,
    %119 = vector.extract_strided_slice %5 {offsets = [10, 0], sizes = [2, 256], strides = [1, 1]} : vector<16x256xf32> to vector<2x256xf32>
    %cst_35 = arith.constant dense<0.000000e+00> : vector<2x256xf32>
    %120 = tpu.matmul %117, %6, %cst_35 {dimension_numbers = #tpu.dot_dimension_numbers<[1], [0], [0], [1], [0, 0, 1, 1], [], []>} : vector<2x64xf32>, vector<64x256xf32>, vector<2x256xf32> -> vector<2x256xf32>
    %121 = arith.addf %119, %120 : vector<2x256xf32>
    %122 = vector.extract_strided_slice %121 {offsets = [0, 0], sizes = [2, 192], strides = [1, 1]} : vector<2x256xf32> to vector<2x192xf32>
    %cst_36 = arith.constant 5.000000e-01 : f32
    %123 = vector.broadcast %cst_36 : f32 to vector<2x192xf32>
    %124 = arith.mulf %123, %122 : vector<2x192xf32>
    %125 = math.tanh %124 : vector<2x192xf32>
    %cst_37 = arith.constant 5.000000e-01 : f32
    %126 = vector.broadcast %cst_37 : f32 to vector<2x192xf32>
    %127 = arith.mulf %126, %125 : vector<2x192xf32>
    %cst_38 = arith.constant 5.000000e-01 : f32
    %128 = vector.broadcast %cst_38 : f32 to vector<2x192xf32>
    %129 = arith.addf %127, %128 : vector<2x192xf32>
    %130 = vector.extract_strided_slice %121 {offsets = [0, 192], sizes = [2, 64], strides = [1, 1]} : vector<2x256xf32> to vector<2x64xf32>
    %131 = math.tanh %130 : vector<2x64xf32>
    %132 = vector.extract_strided_slice %129 {offsets = [0, 0], sizes = [2, 64], strides = [1, 1]} : vector<2x192xf32> to vector<2x64xf32>
    %133 = vector.extract_strided_slice %129 {offsets = [0, 64], sizes = [2, 64], strides = [1, 1]} : vector<2x192xf32> to vector<2x64xf32>
    %134 = vector.extract_strided_slice %129 {offsets = [0, 128], sizes = [2, 64], strides = [1, 1]} : vector<2x192xf32> to vector<2x64xf32>
    %135 = arith.mulf %133, %115 : vector<2x64xf32>
    %136 = arith.mulf %132, %131 : vector<2x64xf32>
    %137 = arith.addf %135, %136 : vector<2x64xf32>
    %138 = math.tanh %137 : vector<2x64xf32>
    %139 = arith.mulf %134, %138 : vector<2x64xf32>
    %c10 = arith.constant 10 : index
    %c0_39 = arith.constant 0 : index
    %140 = vector.load %arg7[%c10, %c0_39] : memref<16x64xf32, #tpu.memory_space<vmem>>, vector<2x64xf32>
    tpu.vector_store %arg7[%c10, %c0_39], %139 {strides = array<i32>} : memref<16x64xf32, #tpu.memory_space<vmem>>, vector<2x64xf32>,
    %141 = vector.extract_strided_slice %5 {offsets = [12, 0], sizes = [2, 256], strides = [1, 1]} : vector<16x256xf32> to vector<2x256xf32>
    %cst_40 = arith.constant dense<0.000000e+00> : vector<2x256xf32>
    %142 = tpu.matmul %139, %6, %cst_40 {dimension_numbers = #tpu.dot_dimension_numbers<[1], [0], [0], [1], [0, 0, 1, 1], [], []>} : vector<2x64xf32>, vector<64x256xf32>, vector<2x256xf32> -> vector<2x256xf32>
    %143 = arith.addf %141, %142 : vector<2x256xf32>
    %144 = vector.extract_strided_slice %143 {offsets = [0, 0], sizes = [2, 192], strides = [1, 1]} : vector<2x256xf32> to vector<2x192xf32>
    %cst_41 = arith.constant 5.000000e-01 : f32
    %145 = vector.broadcast %cst_41 : f32 to vector<2x192xf32>
    %146 = arith.mulf %145, %144 : vector<2x192xf32>
    %147 = math.tanh %146 : vector<2x192xf32>
    %cst_42 = arith.constant 5.000000e-01 : f32
    %148 = vector.broadcast %cst_42 : f32 to vector<2x192xf32>
    %149 = arith.mulf %148, %147 : vector<2x192xf32>
    %cst_43 = arith.constant 5.000000e-01 : f32
    %150 = vector.broadcast %cst_43 : f32 to vector<2x192xf32>
    %151 = arith.addf %149, %150 : vector<2x192xf32>
    %152 = vector.extract_strided_slice %143 {offsets = [0, 192], sizes = [2, 64], strides = [1, 1]} : vector<2x256xf32> to vector<2x64xf32>
    %153 = math.tanh %152 : vector<2x64xf32>
    %154 = vector.extract_strided_slice %151 {offsets = [0, 0], sizes = [2, 64], strides = [1, 1]} : vector<2x192xf32> to vector<2x64xf32>
    %155 = vector.extract_strided_slice %151 {offsets = [0, 64], sizes = [2, 64], strides = [1, 1]} : vector<2x192xf32> to vector<2x64xf32>
    %156 = vector.extract_strided_slice %151 {offsets = [0, 128], sizes = [2, 64], strides = [1, 1]} : vector<2x192xf32> to vector<2x64xf32>
    %157 = arith.mulf %155, %137 : vector<2x64xf32>
    %158 = arith.mulf %154, %153 : vector<2x64xf32>
    %159 = arith.addf %157, %158 : vector<2x64xf32>
    %160 = math.tanh %159 : vector<2x64xf32>
    %161 = arith.mulf %156, %160 : vector<2x64xf32>
    %c12 = arith.constant 12 : index
    %c0_44 = arith.constant 0 : index
    %162 = vector.load %arg7[%c12, %c0_44] : memref<16x64xf32, #tpu.memory_space<vmem>>, vector<2x64xf32>
    tpu.vector_store %arg7[%c12, %c0_44], %161 {strides = array<i32>} : memref<16x64xf32, #tpu.memory_space<vmem>>, vector<2x64xf32>,
    %163 = vector.extract_strided_slice %5 {offsets = [14, 0], sizes = [2, 256], strides = [1, 1]} : vector<16x256xf32> to vector<2x256xf32>
    %cst_45 = arith.constant dense<0.000000e+00> : vector<2x256xf32>
    %164 = tpu.matmul %161, %6, %cst_45 {dimension_numbers = #tpu.dot_dimension_numbers<[1], [0], [0], [1], [0, 0, 1, 1], [], []>} : vector<2x64xf32>, vector<64x256xf32>, vector<2x256xf32> -> vector<2x256xf32>
    %165 = arith.addf %163, %164 : vector<2x256xf32>
    %166 = vector.extract_strided_slice %165 {offsets = [0, 0], sizes = [2, 192], strides = [1, 1]} : vector<2x256xf32> to vector<2x192xf32>
    %cst_46 = arith.constant 5.000000e-01 : f32
    %167 = vector.broadcast %cst_46 : f32 to vector<2x192xf32>
    %168 = arith.mulf %167, %166 : vector<2x192xf32>
    %169 = math.tanh %168 : vector<2x192xf32>
    %cst_47 = arith.constant 5.000000e-01 : f32
    %170 = vector.broadcast %cst_47 : f32 to vector<2x192xf32>
    %171 = arith.mulf %170, %169 : vector<2x192xf32>
    %cst_48 = arith.constant 5.000000e-01 : f32
    %172 = vector.broadcast %cst_48 : f32 to vector<2x192xf32>
    %173 = arith.addf %171, %172 : vector<2x192xf32>
    %174 = vector.extract_strided_slice %165 {offsets = [0, 192], sizes = [2, 64], strides = [1, 1]} : vector<2x256xf32> to vector<2x64xf32>
    %175 = math.tanh %174 : vector<2x64xf32>
    %176 = vector.extract_strided_slice %173 {offsets = [0, 0], sizes = [2, 64], strides = [1, 1]} : vector<2x192xf32> to vector<2x64xf32>
    %177 = vector.extract_strided_slice %173 {offsets = [0, 64], sizes = [2, 64], strides = [1, 1]} : vector<2x192xf32> to vector<2x64xf32>
    %178 = vector.extract_strided_slice %173 {offsets = [0, 128], sizes = [2, 64], strides = [1, 1]} : vector<2x192xf32> to vector<2x64xf32>
    %179 = arith.mulf %177, %159 : vector<2x64xf32>
    %180 = arith.mulf %176, %175 : vector<2x64xf32>
    %181 = arith.addf %179, %180 : vector<2x64xf32>
    %182 = math.tanh %181 : vector<2x64xf32>
    %183 = arith.mulf %178, %182 : vector<2x64xf32>
    %c14 = arith.constant 14 : index
    %c0_49 = arith.constant 0 : index
    %184 = vector.load %arg7[%c14, %c0_49] : memref<16x64xf32, #tpu.memory_space<vmem>>, vector<2x64xf32>
    tpu.vector_store %arg7[%c14, %c0_49], %183 {strides = array<i32>} : memref<16x64xf32, #tpu.memory_space<vmem>>, vector<2x64xf32>,
    %c0_50 = arith.constant 0 : index
    %c0_51 = arith.constant 0 : index
    %185 = vector.load %arg7[%c0_50, %c0_51] : memref<16x64xf32, #tpu.memory_space<vmem>>, vector<16x64xf32>
    %c0_52 = arith.constant 0 : index
    %c0_53 = arith.constant 0 : index
    %186 = vector.load %arg4[%c0_52, %c0_53] : memref<64x2xf32, #tpu.memory_space<vmem>>, vector<64x2xf32>
    %cst_54 = arith.constant dense<0.000000e+00> : vector<16x2xf32>
    %187 = tpu.matmul %185, %186, %cst_54 {dimension_numbers = #tpu.dot_dimension_numbers<[1], [0], [0], [1], [0, 0, 1, 1], [], []>} : vector<16x64xf32>, vector<64x2xf32>, vector<16x2xf32> -> vector<16x2xf32>
    %c0_55 = arith.constant 0 : index
    %c0_56 = arith.constant 0 : index
    %188 = vector.load %arg5[%c0_55, %c0_56] : memref<1x2xf32, #tpu.memory_space<vmem>>, vector<1x2xf32>
    %189 = vector.broadcast %188 : vector<1x2xf32> to vector<16x2xf32>
    %190 = arith.addf %187, %189 : vector<16x2xf32>
    %c0_57 = arith.constant 0 : index
    %c0_58 = arith.constant 0 : index
    %191 = vector.load %arg6[%c0_57, %c0_58] : memref<16x2xf32, #tpu.memory_space<vmem>>, vector<16x2xf32>
    tpu.vector_store %arg6[%c0_57, %c0_58], %190 {strides = array<i32>} : memref<16x2xf32, #tpu.memory_space<vmem>>, vector<16x2xf32>,
    return
  }
}

</mosaic_0001>

<bundles_post_ra>
// kernel: tpu_custom_call.1
= control target key start
LH: loop header
LB: loop body
LE: loop exit
PB: predicated region body
PF: predicated region fallthrough
CT: control target
= control target key end

     0   :  { %11 = vsyncpa [#allocation4], 0  ;;  %s1349_s0 = inlined_call_operand.hbm [shape: f32[16,32], index: 0, kind: input, shape index: {}]   ;;  %s1350_s1 = inlined_call_operand.vmem [shape: f32[32,256], index: 1, kind: input, shape index: {}]   ;;  %s1351_s2 = inlined_call_operand.hbm [shape: f32[64,256], index: 2, kind: input, shape index: {}]   ;;  %s1352_s3 = inlined_call_operand.vmem [shape: f32[1,256], index: 3, kind: input, shape index: {}]   ;;  %s1353_s4 = inlined_call_operand.vmem [shape: f32[64,2], index: 4, kind: input, shape index: {}]   ;;  %s1354_s5 = inlined_call_operand.vmem [shape: f32[1,2], index: 5, kind: input, shape index: {}]   ;;  %s1355_s6 = inlined_call_operand.vmem [shape: f32[16,2], index: 6, kind: output, shape index: {}]  }
   0x1   :  { %s17_s23 = sshll.u32 %s1349_s0, 4  ;;  %s18_s23 = int_to_ptr.hbm [resolvable:$true] %s17_s23 }
   0x2   :  { %12 = vsyncpa [#allocation6], 0  ;;  %s980_s24 = smov [#allocation3]   ;;  %s32_s28 = sshll.u32 %s1351_s2, 4  ;;  %s33_s28 = int_to_ptr.hbm [resolvable:$true] %s32_s28 }
   0x3   :  { %s19_s25 = sshll.u32 %s980_s24, 4  ;;  %s981_s29 = smov 128   ;;  %s20_s25 = int_to_ptr.vmem [resolvable:$true] %s19_s25 }
   0x4   :  { %s982_s30 = smov 8   ;;  %s983_s7 = smov [#allocation5]  }
   0x5   :  { %25 = dma.hbm_to_vmem [thread:$0]  %s18_s23, 256, %s20_s25, [#allocation4], %s981_s29, %s981_s29, %s982_s30  }
   0x6   :  { %s34_s8 = sshll.u32 %s983_s7, 4  ;;  %s984_s9 = smov 256   ;;  %s35_s8 = int_to_ptr.vmem [resolvable:$true] %s34_s8 }
   0x7   :  { %s985_s10 = smov 16  }
   0x8   :  { %40 = dma.hbm_to_vmem [thread:$0]  %s33_s28, 2048, %s35_s8, [#allocation6], %s984_s9, %s984_s9, %s985_s10  }
   0x9   :  { %976 = dma.done.wait [#allocation4], 256  }
   0xa   :  { %977 = vsyncadd [#allocation4], 4294967040 }
   0xb   :  { %978 = dma.done.wait [#allocation6], 2048  }
   0xc   :  { %979 = vsyncadd [#allocation6], 4294965248  ;;  %v1029_v0 = vld [vmem:[#allocation5 + $0x70] sm:$0xff]  ;;  %v1031_v1 = vld [vmem:[#allocation5 + $0x60] sm:$0xff]  ;;  %vm71_vm0 = vcmask 261120   ;;  %v986_v20 = vmov 0.0  }
   0xd   :  { %152 = vmatpush.msra.mxu3 %v1029_v0  ;;  %308 = vmatpush.msra.mxu2 %v1029_v0  ;;  %v1035_v2 = vld [vmem:[#allocation5 + $0x50] sm:$0xff]  ;;  %v1042_v4 = vld [vmem:[#allocation5 + $0x40] sm:$0xff]  ;;  %v64_v8 = vld [vmem:[%s1350_s1 + $0x38] sm:$0xff]  ;;  %s987_s26 = smov 64   ;;  %vm212_vm1 = vcmask 517120   ;;  %vm140_vm2 = vcmask 523264  }
   0xe   :  { %v63_v3 = vld [vmem:[%s1350_s1 + $0x30] sm:$0xff]  ;;  %v61_v5 = vld [vmem:[%s1350_s1 + $0x20] sm:$0xff]  ;;  %113 = vmatpush.msra.mxu1 %v64_v8  ;;  %v62_v10 = vld [vmem:[%s1350_s1 + $0x28] sm:$0xff]  ;;  %vm294_vm3 = vcmask 519170   ;;  %vm377_vm4 = vcmask 521220   ;;  %vm460_vm5 = vcmask 523270  }
   0xf   :  { %153 = vmatpush.msra.mxu3 %v1031_v1  ;;  %309 = vmatpush.msra.mxu2 %v1031_v1  ;;  %v59_v6 = vld [vmem:[%s1350_s1 + $0x10] sm:$0xff]  ;;  %v57_v9 = vld [vmem:[%s1350_s1] sm:$0xff]  ;;  %v60_v13 = vld [vmem:[%s1350_s1 + $0x18] sm:$0xff]  ;;  %vm826_vm6 = vcmask 15360  }
  0x10   :  { %90 = vmatpush.msra.mxu0 %v63_v3  ;;  %v1052_v7 = vld [vmem:[#allocation5 + $0x30] sm:$0xff]  ;;  %v1064_v11 = vld [vmem:[#allocation5 + $0x20] sm:$0xff]  ;;  %114 = vmatpush.msra.mxu1 %v62_v10  ;;  %v58_v15 = vld [vmem:[%s1350_s1 + $0x8] sm:$0xff] }
  0x11   :  { %154 = vmatpush.msra.mxu3 %v1035_v2  ;;  %310 = vmatpush.msra.mxu2 %v1035_v2  ;;  %v55_v12 = vld [vmem:[#allocation3] sm:$0xff]  ;;  %v1079_v16 = vld [vmem:[#allocation5] sm:$0xff]  ;;  %v1083_v17 = vld [vmem:[#allocation5 + $0x78] sm:$0xff] }
  0x12   :  { %91 = vmatpush.msra.mxu0 %v61_v5  ;;  %v1071_v14 = vld [vmem:[#allocation5 + $0x10] sm:$0xff]  ;;  %115 = vmatpush.msra.mxu1 %v60_v13  ;;  %v1088_v18 = vld [vmem:[#allocation5 + $0x68] sm:$0xff]  ;;  %v1093_v19 = vld [vmem:[#allocation5 + $0x58] sm:$0xff] }
  0x13   :  { %155 = vmatpush.msra.mxu3 %v1042_v4  ;;  %311 = vmatpush.msra.mxu2 %v1042_v4  ;;  %v1098_v21 = vld [vmem:[#allocation5 + $0x48] sm:$0xff]  ;;  %v1104_v22 = vld [vmem:[#allocation5 + $0x38] sm:$0xff]  ;;  %v1170_v27 = vld [vmem:[%s1352_s3] sm:$0x3] }
  0x14   :  { %92 = vmatpush.msra.mxu0 %v59_v6  ;;  %116 = vmatpush.msra.mxu1 %v58_v15  ;;  %v1110_v23 = vld [vmem:[#allocation5 + $0x28] sm:$0xff]  ;;  %v1116_v24 = vld [vmem:[#allocation5 + $0x18] sm:$0xff]  ;;  %v68_v28 = vperm.slane %v1170_v27, 1  ;;  %v67_v34 = vperm.slane %v1170_v27, 0 }
  0x15   :  { %156 = vmatpush.msra.mxu3 %v1052_v7  ;;  %312 = vmatpush.msra.mxu2 %v1052_v7  ;;  %v1122_v25 = vld [vmem:[#allocation5 + $0x8] sm:$0xff]  ;;  %v56_v44 = vld [vmem:[#allocation3 + $0x8] sm:$0xff] }
  0x16   :  { %93 = vmatpush.msra.mxu0 %v57_v9  ;;  %837 = vmatmul.msk.f32.vlgmr.msra.gmra.mxu1 %vm71_vm0, %v55_v12 }
  0x17   :  { %157 = vmatpush.msra.mxu3 %v1064_v11  ;;  %835 = vmatmul.msk.f32.vlgmr.msra.gmra.mxu0 %vm71_vm0, %v55_v12 }
  0x18   :  { %225 = vmatpush.msrb.mxu0 %v1029_v0  ;;  %313 = vmatpush.msra.mxu2 %v1064_v11 }
  0x19   :  { %158 = vmatpush.msra.mxu3 %v1071_v14  ;;  %245 = vmatpush.msrb.mxu1 %v1083_v17 }
  0x1a   :  { %226 = vmatpush.msrb.mxu0 %v1031_v1  ;;  %314 = vmatpush.msra.mxu2 %v1071_v14 }
  0x1b   :  { %159 = vmatpush.msra.mxu3 %v1079_v16  ;;  %246 = vmatpush.msrb.mxu1 %v1088_v18 }
  0x1c   :  { %160 = vmatmul.f32.vlgmr.msra.gmra.mxu3 %v986_v20  ;;  %227 = vmatpush.msrb.mxu0 %v1035_v2 }
  0x1d   :  { %172 = vmatpush.msrb.mxu3 %v1083_v17  ;;  %247 = vmatpush.msrb.mxu1 %v1093_v19 }
  0x1e   :  { %228 = vmatpush.msrb.mxu0 %v1042_v4  ;;  %315 = vmatpush.msra.mxu2 %v1079_v16 }
  0x1f   :  { %173 = vmatpush.msrb.mxu3 %v1088_v18  ;;  %248 = vmatpush.msrb.mxu1 %v1098_v21 }
  0x20   :  { %229 = vmatpush.msrb.mxu0 %v1052_v7  ;;  %474 = vmatpush.msrb.mxu2 %v1029_v0 }
  0x21   :  { %174 = vmatpush.msrb.mxu3 %v1093_v19  ;;  %249 = vmatpush.msrb.mxu1 %v1104_v22 }
  0x22   :  { %230 = vmatpush.msrb.mxu0 %v1064_v11  ;;  %475 = vmatpush.msrb.mxu2 %v1031_v1 }
  0x23   :  { %175 = vmatpush.msrb.mxu3 %v1098_v21  ;;  %250 = vmatpush.msrb.mxu1 %v1110_v23 }
  0x24   :  { %231 = vmatpush.msrb.mxu0 %v1071_v14  ;;  %476 = vmatpush.msrb.mxu2 %v1035_v2 }
  0x25   :  { %176 = vmatpush.msrb.mxu3 %v1104_v22  ;;  %251 = vmatpush.msrb.mxu1 %v1116_v24 }
  0x26   :  { %232 = vmatpush.msrb.mxu0 %v1079_v16  ;;  %477 = vmatpush.msrb.mxu2 %v1042_v4 }
  0x27   :  { %177 = vmatpush.msrb.mxu3 %v1110_v23  ;;  %252 = vmatpush.msrb.mxu1 %v1122_v25 }
  0x28   :  { %391 = vmatpush.msra.mxu0 %v1029_v0  ;;  %478 = vmatpush.msrb.mxu2 %v1052_v7 }
  0x29   :  { %178 = vmatpush.msrb.mxu3 %v1116_v24  ;;  %411 = vmatpush.msra.mxu1 %v1083_v17 }
  0x2a   :  { %392 = vmatpush.msra.mxu0 %v1031_v1  ;;  %479 = vmatpush.msrb.mxu2 %v1064_v11 }
  0x2b   :  { %179 = vmatpush.msrb.mxu3 %v1122_v25  ;;  %412 = vmatpush.msra.mxu1 %v1088_v18 }
  0x2c   :  { %180 = vmatmul.f32.vlgmr.msrb.gmra.mxu3 %v986_v20  ;;  %393 = vmatpush.msra.mxu0 %v1035_v2 }
  0x2d   :  { %328 = vmatpush.msra.mxu3 %v1083_v17  ;;  %413 = vmatpush.msra.mxu1 %v1093_v19 }
  0x2e   :  { %394 = vmatpush.msra.mxu0 %v1042_v4  ;;  %480 = vmatpush.msrb.mxu2 %v1071_v14 }
  0x2f   :  { %329 = vmatpush.msra.mxu3 %v1088_v18  ;;  %414 = vmatpush.msra.mxu1 %v1098_v21 }
  0x30   :  { %395 = vmatpush.msra.mxu0 %v1052_v7  ;;  %481 = vmatpush.msrb.mxu2 %v1079_v16 }
  0x31   :  { %330 = vmatpush.msra.mxu3 %v1093_v19  ;;  %415 = vmatpush.msra.mxu1 %v1104_v22 }
  0x32   :  { %396 = vmatpush.msra.mxu0 %v1064_v11  ;;  %838 = vmatmul.msk.f32.gmra.mxu1 %vm71_vm0, %v56_v44 }
  0x33   :  { %331 = vmatpush.msra.mxu3 %v1098_v21  ;;  %416 = vmatpush.msra.mxu1 %v1110_v23 }
  0x34   :  { %397 = vmatpush.msra.mxu0 %v1071_v14 }
  0x35   :  { %332 = vmatpush.msra.mxu3 %v1104_v22  ;;  %417 = vmatpush.msra.mxu1 %v1116_v24 }
  0x36   :  { %398 = vmatpush.msra.mxu0 %v1079_v16 }
  0x37   :  { %333 = vmatpush.msra.mxu3 %v1110_v23  ;;  %418 = vmatpush.msra.mxu1 %v1122_v25 }
  0x38   :  { %836 = vmatmul.msk.f32.gmra.mxu0 %vm71_vm0, %v56_v44 }
  0x39   :  { %334 = vmatpush.msra.mxu3 %v1116_v24 }
  0x3b   :  { %335 = vmatpush.msra.mxu3 %v1122_v25 }
  0x3d   :  { %494 = vmatpush.msrb.mxu3 %v1083_v17 }
  0x3f   :  { %495 = vmatpush.msrb.mxu3 %v1088_v18 }
  0x41   :  { %496 = vmatpush.msrb.mxu3 %v1093_v19 }
  0x43   :  { %497 = vmatpush.msrb.mxu3 %v1098_v21 }
  0x45   :  { %498 = vmatpush.msrb.mxu3 %v1104_v22 }
  0x47   :  { %499 = vmatpush.msrb.mxu3 %v1110_v23 }
  0x49   :  { %500 = vmatpush.msrb.mxu3 %v1116_v24 }
  0x4b   :  { %501 = vmatpush.msrb.mxu3 %v1122_v25 }
  0x93   :  { %v118_v29 = vpop.f32.mrf.mxu1 }
  0x94   :  { %v1175_v30 = vadd.f32 %v118_v29, %v68_v28  ;;  %v95_v35 = vpop.f32.mrf.mxu0 }
  0x95   :  { %v1182_v36 = vadd.f32 %v95_v35, %v67_v34 }
  0x9f   :  { %v161_v26 = vpop.f32.mrf.mxu3 }
  0xa0   :  { %v184_v37 = vadd.f32 %v161_v26, %v1182_v36 }
  0xa2   :  { %v186_v38 = vmul.f32 0.5, %v184_v37 }
  0xaf   :  { %v181_v31 = vpop.f32.mrf.mxu3  ;;  %v1208_v55 = vpop.f32.mrf.mxu1 }
  0xb0   :  { %v185_v32 = vadd.f32 %v181_v31, %v1175_v30 }
  0xb2   :  { %864 = vtanh.f32 %v185_v32  ;;  %v187_v49 = vmul.f32 0.5, %v185_v32 }
  0xb3   :  { %866 = vtanh.f32 %v186_v38 }
  0xb5   :  { %v1212_v60 = vpop.f32.mrf.mxu0 }
  0xb8   :  { %v865_v33 = vpop.eup %864 }
  0xb9   :  { %197 = vrot.lane.b32.xlu0 %v865_v33, %s987_s26  ;;  %v867_v39 = vpop.eup %866 }
  0xba   :  { %v190_v40 = vmul.f32 0.5, %v867_v39 }
  0xbc   :  { %v192_v41 = vadd.f32 0.5, %v190_v40 }
  0xbe   :  { %v195_v45 = vmul.f32 0.0, %v192_v41 }
 0x12b   :  { %v198_v42 = vpop.permute.xlu0 %197 }
 0x12c   :  { %v200_v43 = vmul.f32 %v198_v42, %v192_v41 }
 0x12e   :  { %202 = vrot.lane.b32.xlu0 %v200_v43, %s987_s26 }
 0x1a0   :  { %v203_v46 = vpop.permute.xlu0 %202 }
 0x1a1   :  { %v205_v47 = vadd.f32 %v203_v46, %v195_v45 }
 0x1a3   :  { %868 = vtanh.f32 %v205_v47  ;;  %v275_v12 = vrot.slane %v205_v47, 6 }
 0x1a4   :  { %870 = vtanh.f32 %v187_v49 }
 0x1a9   :  { %v869_v48 = vpop.eup %868 }
 0x1aa   :  { %208 = vrot.lane.b32.xlu1 %v869_v48, %s987_s26  ;;  %v871_v50 = vpop.eup %870 }
 0x1ab   :  { %v191_v51 = vmul.f32 0.5, %v871_v50 }
 0x1ad   :  { %v193_v52 = vadd.f32 0.5, %v191_v51 }
 0x21c   :  { %v209_v53 = vpop.permute.xlu1 %208 }
 0x21d   :  { %v211_v54 = vmul.f32 %v209_v53, %v193_v52 }
 0x21f   :  { %213 = vst.msk [vmem:[#allocation2] sm:$0x3] %vm212_vm1, %v211_v54  ;;  %839 = vmatmul.msk.f32.vlgmr.msrb.gmra.mxu0 %vm140_vm2, %v211_v54  ;;  %840 = vmatmul.msk.f32.vlgmr.msrb.gmra.mxu1 %vm140_vm2, %v211_v54 }
 0x220   :  { %549 = vmatpush.msrb.mxu0 %v1029_v0  ;;  %569 = vmatpush.msrb.mxu1 %v1083_v17 }
 0x222   :  { %550 = vmatpush.msrb.mxu0 %v1031_v1  ;;  %570 = vmatpush.msrb.mxu1 %v1088_v18 }
 0x224   :  { %551 = vmatpush.msrb.mxu0 %v1035_v2  ;;  %571 = vmatpush.msrb.mxu1 %v1093_v19 }
 0x226   :  { %552 = vmatpush.msrb.mxu0 %v1042_v4  ;;  %572 = vmatpush.msrb.mxu1 %v1098_v21 }
 0x228   :  { %553 = vmatpush.msrb.mxu0 %v1052_v7  ;;  %573 = vmatpush.msrb.mxu1 %v1104_v22 }
 0x22a   :  { %554 = vmatpush.msrb.mxu0 %v1064_v11  ;;  %574 = vmatpush.msrb.mxu1 %v1110_v23 }
 0x22c   :  { %555 = vmatpush.msrb.mxu0 %v1071_v14  ;;  %575 = vmatpush.msrb.mxu1 %v1116_v24 }
 0x22e   :  { %556 = vmatpush.msrb.mxu0 %v1079_v16  ;;  %576 = vmatpush.msrb.mxu1 %v1122_v25 }
 0x29c   :  { %v254_v56 = vpop.f32.mrf.mxu1  ;;  %v234_v61 = vpop.f32.mrf.mxu0 }
 0x29d   :  { %v260_v57 = vrot.slane %v254_v56, 6  ;;  %v259_v62 = vrot.slane %v234_v61, 6 }
 0x29f   :  { %v264_v58 = vadd.f32 %v260_v57, %v1175_v30  ;;  %v263_v63 = vadd.f32 %v259_v62, %v1182_v36 }
 0x2a1   :  { %872 = vtanh.f32 %v264_v58  ;;  %v265_v3 = vmul.f32 0.5, %v263_v63  ;;  %v266_v29 = vmul.f32 0.5, %v264_v58 }
 0x2a3   :  { %874 = vtanh.f32 %v265_v3 }
 0x2a7   :  { %v873_v59 = vpop.eup %872 }
 0x2a8   :  { %279 = vrot.lane.b32.xlu1 %v873_v59, %s987_s26 }
 0x2a9   :  { %v875_v5 = vpop.eup %874 }
 0x2aa   :  { %v269_v6 = vmul.f32 0.5, %v875_v5 }
 0x2ac   :  { %v271_v8 = vadd.f32 0.5, %v269_v6 }
 0x2ae   :  { %v277_v13 = vmul.f32 %v275_v12, %v271_v8 }
 0x31a   :  { %v280_v9 = vpop.permute.xlu1 %279 }
 0x31b   :  { %v282_v10 = vmul.f32 %v280_v9, %v271_v8 }
 0x31d   :  { %284 = vrot.lane.b32.xlu2 %v282_v10, %s987_s26 }
 0x377   :  { %v285_v15 = vpop.permute.xlu2 %284 }
 0x378   :  { %v287_v20 = vadd.f32 %v285_v15, %v277_v13 }
 0x37a   :  { %876 = vtanh.f32 %v287_v20  ;;  %v358_v52 = vrot.slane %v287_v20, 6  ;;  %v1271_v20 = vadd.f32 %v1208_v55, %v68_v28 }
 0x37b   :  { %878 = vtanh.f32 %v266_v29 }
 0x380   :  { %v877_v26 = vpop.eup %876 }
 0x381   :  { %290 = vrot.lane.b32.xlu2 %v877_v26, %s987_s26  ;;  %v879_v31 = vpop.eup %878 }
 0x382   :  { %v270_v32 = vmul.f32 0.5, %v879_v31 }
 0x384   :  { %v272_v33 = vadd.f32 0.5, %v270_v32 }
 0x3db   :  { %v291_v35 = vpop.permute.xlu2 %290 }
 0x3dc   :  { %v293_v37 = vmul.f32 %v291_v35, %v272_v33  ;;  %v1278_v33 = vadd.f32 %v1212_v60, %v67_v34 }
 0x3de   :  { %295 = vst.msk [vmem:[#allocation2] sm:$0xc] %vm294_vm3, %v293_v37  ;;  %v297_v38 = vrot.slane %v293_v37, 2 }
 0x3e0   :  { %841 = vmatmul.msk.f32.vlgmr.msra.gmra.mxu2 %vm140_vm2, %v297_v38  ;;  %842 = vmatmul.msk.f32.vlgmr.msra.gmra.mxu3 %vm140_vm2, %v297_v38 }
 0x3e1   :  { %631 = vmatpush.msra.mxu2 %v1029_v0  ;;  %651 = vmatpush.msra.mxu3 %v1083_v17 }
 0x3e3   :  { %632 = vmatpush.msra.mxu2 %v1031_v1  ;;  %652 = vmatpush.msra.mxu3 %v1088_v18 }
 0x3e5   :  { %633 = vmatpush.msra.mxu2 %v1035_v2  ;;  %653 = vmatpush.msra.mxu3 %v1093_v19 }
 0x3e7   :  { %634 = vmatpush.msra.mxu2 %v1042_v4  ;;  %654 = vmatpush.msra.mxu3 %v1098_v21 }
 0x3e9   :  { %635 = vmatpush.msra.mxu2 %v1052_v7  ;;  %655 = vmatpush.msra.mxu3 %v1104_v22 }
 0x3eb   :  { %636 = vmatpush.msra.mxu2 %v1064_v11  ;;  %656 = vmatpush.msra.mxu3 %v1110_v23 }
 0x3ed   :  { %637 = vmatpush.msra.mxu2 %v1071_v14  ;;  %657 = vmatpush.msra.mxu3 %v1116_v24 }
 0x3ef   :  { %638 = vmatpush.msra.mxu2 %v1079_v16  ;;  %658 = vmatpush.msra.mxu3 %v1122_v25 }
 0x463   :  { %v337_v39 = vpop.f32.mrf.mxu3  ;;  %v317_v43 = vpop.f32.mrf.mxu2 }
 0x464   :  { %v343_v40 = vrot.slane %v337_v39, 4  ;;  %v342_v44 = vrot.slane %v317_v43, 4 }
 0x466   :  { %v347_v41 = vadd.f32 %v343_v40, %v1175_v30  ;;  %v346_v45 = vadd.f32 %v342_v44, %v1182_v36 }
 0x468   :  { %880 = vtanh.f32 %v347_v41  ;;  %v348_v46 = vmul.f32 0.5, %v346_v45  ;;  %v349_v58 = vmul.f32 0.5, %v347_v41 }
 0x46a   :  { %882 = vtanh.f32 %v348_v46 }
 0x46e   :  { %v881_v42 = vpop.eup %880 }
 0x46f   :  { %362 = vrot.lane.b32.xlu0 %v881_v42, %s987_s26 }
 0x470   :  { %v883_v47 = vpop.eup %882 }
 0x471   :  { %v352_v48 = vmul.f32 0.5, %v883_v47 }
 0x473   :  { %v354_v49 = vadd.f32 0.5, %v352_v48 }
 0x475   :  { %v360_v53 = vmul.f32 %v358_v52, %v354_v49 }
 0x4e1   :  { %v363_v50 = vpop.permute.xlu0 %362 }
 0x4e2   :  { %v365_v51 = vmul.f32 %v363_v50, %v354_v49 }
 0x4e4   :  { %367 = vrot.lane.b32.xlu1 %v365_v51, %s987_s26 }
 0x556   :  { %v368_v54 = vpop.permute.xlu1 %367 }
 0x557   :  { %v370_v56 = vadd.f32 %v368_v54, %v360_v53 }
 0x559   :  { %884 = vtanh.f32 %v370_v56 }
 0x55a   :  { %886 = vtanh.f32 %v349_v58 }
 0x55f   :  { %v885_v57 = vpop.eup %884 }
 0x560   :  { %373 = vrot.lane.b32.xlu2 %v885_v57, %s987_s26  ;;  %v887_v59 = vpop.eup %886 }
 0x561   :  { %v353_v61 = vmul.f32 0.5, %v887_v59 }
 0x563   :  { %v355_v62 = vadd.f32 0.5, %v353_v61 }
 0x5ba   :  { %v374_v63 = vpop.permute.xlu2 %373 }
 0x5bb   :  { %v376_v3 = vmul.f32 %v374_v63, %v355_v62 }
 0x5bd   :  { %378 = vst.msk [vmem:[#allocation2] sm:$0x30] %vm377_vm4, %v376_v3  ;;  %v380_v5 = vrot.slane %v376_v3, 4  ;;  %v792_v3 = vld [vmem:[%s1353_s4 + $0x38] sm:$0xff] }
 0x5bf   :  { %843 = vmatmul.msk.f32.vlgmr.msra.gmra.mxu0 %vm140_vm2, %v380_v5  ;;  %844 = vmatmul.msk.f32.vlgmr.msra.gmra.mxu1 %vm140_vm2, %v380_v5  ;;  %v791_v5 = vld [vmem:[%s1353_s4 + $0x30] sm:$0xff] }
 0x5c0   :  { %713 = vmatpush.msra.mxu0 %v1029_v0  ;;  %733 = vmatpush.msra.mxu1 %v1083_v17 }
 0x5c2   :  { %714 = vmatpush.msra.mxu0 %v1031_v1  ;;  %734 = vmatpush.msra.mxu1 %v1088_v18 }
 0x5c4   :  { %715 = vmatpush.msra.mxu0 %v1035_v2  ;;  %735 = vmatpush.msra.mxu1 %v1093_v19 }
 0x5c6   :  { %716 = vmatpush.msra.mxu0 %v1042_v4  ;;  %736 = vmatpush.msra.mxu1 %v1098_v21 }
 0x5c8   :  { %717 = vmatpush.msra.mxu0 %v1052_v7  ;;  %737 = vmatpush.msra.mxu1 %v1104_v22 }
 0x5ca   :  { %718 = vmatpush.msra.mxu0 %v1064_v11  ;;  %738 = vmatpush.msra.mxu1 %v1110_v23  ;;  %v441_v23 = vrot.slane %v370_v56, 6 }
 0x5cc   :  { %719 = vmatpush.msra.mxu0 %v1071_v14  ;;  %739 = vmatpush.msra.mxu1 %v1116_v24 }
 0x5ce   :  { %720 = vmatpush.msra.mxu0 %v1079_v16  ;;  %740 = vmatpush.msra.mxu1 %v1122_v25 }
 0x63c   :  { %v420_v0 = vpop.f32.mrf.mxu1  ;;  %v400_v7 = vpop.f32.mrf.mxu0 }
 0x63d   :  { %v426_v1 = vrot.slane %v420_v0, 2  ;;  %v425_v11 = vrot.slane %v400_v7, 2 }
 0x63f   :  { %v430_v2 = vadd.f32 %v426_v1, %v1175_v30  ;;  %v429_v17 = vadd.f32 %v425_v11, %v1182_v36  ;;  %v790_v11 = vld [vmem:[%s1353_s4 + $0x28] sm:$0xff] }
 0x641   :  { %888 = vtanh.f32 %v430_v2  ;;  %v431_v18 = vmul.f32 0.5, %v429_v17  ;;  %v432_v8 = vmul.f32 0.5, %v430_v2  ;;  %v789_v17 = vld [vmem:[%s1353_s4 + $0x20] sm:$0xff] }
 0x643   :  { %890 = vtanh.f32 %v431_v18  ;;  %v788_v18 = vld [vmem:[%s1353_s4 + $0x18] sm:$0xff] }
 0x647   :  { %v889_v4 = vpop.eup %888 }
 0x648   :  { %445 = vrot.lane.b32.xlu0 %v889_v4, %s987_s26 }
 0x649   :  { %v891_v14 = vpop.eup %890 }
 0x64a   :  { %v435_v19 = vmul.f32 0.5, %v891_v14  ;;  %v787_v14 = vld [vmem:[%s1353_s4 + $0x10] sm:$0xff] }
 0x64c   :  { %v437_v21 = vadd.f32 0.5, %v435_v19  ;;  %v786_v19 = vld [vmem:[%s1353_s4 + $0x8] sm:$0xff] }
 0x64e   :  { %v443_v24 = vmul.f32 %v441_v23, %v437_v21 }
 0x6ba   :  { %v446_v16 = vpop.permute.xlu0 %445 }
 0x6bb   :  { %v448_v22 = vmul.f32 %v446_v16, %v437_v21  ;;  %v785_v21 = vld [vmem:[%s1353_s4] sm:$0xff] }
 0x6bd   :  { %450 = vrot.lane.b32.xlu1 %v448_v22, %s987_s26 }
 0x72f   :  { %v451_v25 = vpop.permute.xlu1 %450 }
 0x730   :  { %v453_v30 = vadd.f32 %v451_v25, %v443_v24 }
 0x732   :  { %892 = vtanh.f32 %v453_v30  ;;  %v518_v41 = vrot.slane %v453_v30, 6 }
 0x733   :  { %894 = vtanh.f32 %v432_v8 }
 0x738   :  { %v893_v6 = vpop.eup %892 }
 0x739   :  { %456 = vrot.lane.b32.xlu2 %v893_v6, %s987_s26  ;;  %v895_v36 = vpop.eup %894 }
 0x73a   :  { %v436_v9 = vmul.f32 0.5, %v895_v36 }
 0x73c   :  { %v438_v10 = vadd.f32 0.5, %v436_v9 }
 0x793   :  { %v457_v12 = vpop.permute.xlu2 %456 }
 0x794   :  { %v459_v13 = vmul.f32 %v457_v12, %v438_v10 }
 0x796   :  { %461 = vst.msk [vmem:[#allocation2] sm:$0xc0] %vm460_vm5, %v459_v13  ;;  %v463_v15 = vrot.slane %v459_v13, 6  ;;  %v1323_v13 = vld [vmem:[%s1354_s5] ss:$0 sm:$0xff] }
 0x798   :  { %845 = vmatmul.msk.f32.vlgmr.msrb.gmra.mxu2 %vm140_vm2, %v463_v15  ;;  %846 = vmatmul.msk.f32.vlgmr.msrb.gmra.mxu3 %vm140_vm2, %v463_v15 }
 0x799   :  { %811 = vmatpush.msrb.mxu2 %v792_v3 }
 0x79b   :  { %812 = vmatpush.msrb.mxu2 %v791_v5 }
 0x79d   :  { %813 = vmatpush.msrb.mxu2 %v790_v11  ;;  %v783_v8 = vld [vmem:[#allocation2] sm:$0xff] }
 0x79f   :  { %814 = vmatpush.msrb.mxu2 %v789_v17 }
 0x7a1   :  { %815 = vmatpush.msrb.mxu2 %v788_v18 }
 0x7a3   :  { %816 = vmatpush.msrb.mxu2 %v787_v14 }
 0x7a5   :  { %817 = vmatpush.msrb.mxu2 %v786_v19 }
 0x7a7   :  { %818 = vmatpush.msrb.mxu2 %v785_v21 }
 0x81b   :  { %v503_v26 = vpop.f32.mrf.mxu3  ;;  %v483_v32 = vpop.f32.mrf.mxu2 }
 0x81c   :  { %v507_v29 = vadd.f32 %v503_v26, %v1271_v20  ;;  %v506_v35 = vadd.f32 %v483_v32, %v1278_v33 }
 0x81e   :  { %896 = vtanh.f32 %v507_v29  ;;  %v508_v37 = vmul.f32 0.5, %v506_v35  ;;  %v509_v34 = vmul.f32 0.5, %v507_v29 }
 0x820   :  { %898 = vtanh.f32 %v508_v37 }
 0x824   :  { %v897_v31 = vpop.eup %896 }
 0x825   :  { %522 = vrot.lane.b32.xlu0 %v897_v31, %s987_s26 }
 0x826   :  { %v899_v38 = vpop.eup %898 }
 0x827   :  { %v512_v28 = vmul.f32 0.5, %v899_v38 }
 0x829   :  { %v514_v55 = vadd.f32 0.5, %v512_v28 }
 0x82b   :  { %v520_v42 = vmul.f32 %v518_v41, %v514_v55 }
 0x897   :  { %v523_v39 = vpop.permute.xlu0 %522 }
 0x898   :  { %v525_v40 = vmul.f32 %v523_v39, %v514_v55 }
 0x89a   :  { %527 = vrot.lane.b32.xlu1 %v525_v40, %s987_s26 }
 0x90c   :  { %v528_v43 = vpop.permute.xlu1 %527 }
 0x90d   :  { %v530_v44 = vadd.f32 %v528_v43, %v520_v42 }
 0x90f   :  { %900 = vtanh.f32 %v530_v44  ;;  %v599_v0 = vrot.slane %v530_v44, 6 }
 0x910   :  { %902 = vtanh.f32 %v509_v34 }
 0x915   :  { %v901_v27 = vpop.eup %900 }
 0x916   :  { %533 = vrot.lane.b32.xlu2 %v901_v27, %s987_s26  ;;  %v903_v60 = vpop.eup %902 }
 0x917   :  { %v513_v45 = vmul.f32 0.5, %v903_v60 }
 0x919   :  { %v515_v46 = vadd.f32 0.5, %v513_v45 }
 0x970   :  { %v534_v47 = vpop.permute.xlu2 %533 }
 0x971   :  { %v536_v48 = vmul.f32 %v534_v47, %v515_v46 }
 0x973   :  { %537 = vst.msk [vmem:[#allocation2 + $0x8] sm:$0x3] %vm212_vm1, %v536_v48  ;;  %847 = vmatmul.msk.f32.vlgmr.msrb.gmra.mxu0 %vm140_vm2, %v536_v48  ;;  %848 = vmatmul.msk.f32.vlgmr.msrb.gmra.mxu1 %vm140_vm2, %v536_v48 }
 0x9f0   :  { %v578_v49 = vpop.f32.mrf.mxu1  ;;  %v558_v53 = vpop.f32.mrf.mxu0 }
 0x9f1   :  { %v584_v50 = vrot.slane %v578_v49, 6  ;;  %v583_v54 = vrot.slane %v558_v53, 6 }
 0x9f3   :  { %v588_v51 = vadd.f32 %v584_v50, %v1271_v20  ;;  %v587_v56 = vadd.f32 %v583_v54, %v1278_v33 }
 0x9f5   :  { %904 = vtanh.f32 %v588_v51  ;;  %v589_v57 = vmul.f32 0.5, %v587_v56  ;;  %v590_v16 = vmul.f32 0.5, %v588_v51 }
 0x9f7   :  { %906 = vtanh.f32 %v589_v57 }
 0x9fb   :  { %v905_v52 = vpop.eup %904 }
 0x9fc   :  { %603 = vrot.lane.b32.xlu0 %v905_v52, %s987_s26 }
 0x9fd   :  { %v907_v58 = vpop.eup %906 }
 0x9fe   :  { %v593_v59 = vmul.f32 0.5, %v907_v58 }
 0xa00   :  { %v595_v61 = vadd.f32 0.5, %v593_v59 }
 0xa02   :  { %v601_v1 = vmul.f32 %v599_v0, %v595_v61 }
 0xa6e   :  { %v604_v62 = vpop.permute.xlu0 %603 }
 0xa6f   :  { %v606_v63 = vmul.f32 %v604_v62, %v595_v61 }
 0xa71   :  { %608 = vrot.lane.b32.xlu1 %v606_v63, %s987_s26 }
 0xae3   :  { %v609_v2 = vpop.permute.xlu1 %608 }
 0xae4   :  { %v611_v4 = vadd.f32 %v609_v2, %v601_v1 }
 0xae6   :  { %908 = vtanh.f32 %v611_v4  ;;  %v681_v40 = vrot.slane %v611_v4, 6 }
 0xae7   :  { %910 = vtanh.f32 %v590_v16 }
 0xaec   :  { %v909_v7 = vpop.eup %908 }
 0xaed   :  { %614 = vrot.lane.b32.xlu2 %v909_v7, %s987_s26  ;;  %v911_v22 = vpop.eup %910 }
 0xaee   :  { %v594_v23 = vmul.f32 0.5, %v911_v22 }
 0xaf0   :  { %v596_v24 = vadd.f32 0.5, %v594_v23 }
 0xb47   :  { %v615_v25 = vpop.permute.xlu2 %614 }
 0xb48   :  { %v617_v30 = vmul.f32 %v615_v25, %v596_v24 }
 0xb4a   :  { %618 = vst.msk [vmem:[#allocation2 + $0x8] sm:$0xc] %vm294_vm3, %v617_v30  ;;  %v620_v6 = vrot.slane %v617_v30, 2 }
 0xb4c   :  { %849 = vmatmul.msk.f32.vlgmr.msra.gmra.mxu2 %vm140_vm2, %v620_v6  ;;  %850 = vmatmul.msk.f32.vlgmr.msra.gmra.mxu3 %vm140_vm2, %v620_v6 }
 0xb54   :  { %853 = vmatmul.msk.f32.vlgmr.msrb.gmra.mxu2 %vm140_vm2, %v783_v8 }
 0xbcf   :  { %v640_v36 = vpop.f32.mrf.mxu2  ;;  %v660_v9 = vpop.f32.mrf.mxu3 }
 0xbd0   :  { %v666_v10 = vrot.slane %v660_v9, 4  ;;  %v665_v31 = vrot.slane %v640_v36, 4 }
 0xbd2   :  { %v670_v12 = vadd.f32 %v666_v10, %v1271_v20  ;;  %v669_v32 = vadd.f32 %v665_v31, %v1278_v33 }
 0xbd4   :  { %912 = vtanh.f32 %v670_v12  ;;  %v671_v35 = vmul.f32 0.5, %v669_v32  ;;  %v672_v27 = vmul.f32 0.5, %v670_v12 }
 0xbd6   :  { %914 = vtanh.f32 %v671_v35 }
 0xbd7   :  { %v820_v15 = vpop.f32.mrf.mxu2 }
 0xbd8   :  { %v821_v26 = vadd.f32 %v1323_v13, %v820_v15 }
 0xbda   :  { %v913_v29 = vpop.eup %912  ;;  %827 = vst.msk [vmem:[%s1355_s6] sm:$0xff] %vm826_vm6, %v821_v26 }
 0xbdb   :  { %685 = vrot.lane.b32.xlu0 %v913_v29, %s987_s26 }
 0xbdc   :  { %v915_v37 = vpop.eup %914 }
 0xbdd   :  { %v675_v38 = vmul.f32 0.5, %v915_v37 }
 0xbdf   :  { %v677_v28 = vadd.f32 0.5, %v675_v38 }
 0xbe1   :  { %v683_v41 = vmul.f32 %v681_v40, %v677_v28 }
 0xc4d   :  { %v686_v55 = vpop.permute.xlu0 %685 }
 0xc4e   :  { %v688_v39 = vmul.f32 %v686_v55, %v677_v28 }
 0xc50   :  { %690 = vrot.lane.b32.xlu1 %v688_v39, %s987_s26 }
 0xcc2   :  { %v691_v42 = vpop.permute.xlu1 %690 }
 0xcc3   :  { %v693_v43 = vadd.f32 %v691_v42, %v683_v41 }
 0xcc5   :  { %916 = vtanh.f32 %v693_v43  ;;  %v763_v3 = vrot.slane %v693_v43, 6 }
 0xcc6   :  { %918 = vtanh.f32 %v672_v27 }
 0xccb   :  { %v917_v44 = vpop.eup %916 }
 0xccc   :  { %696 = vrot.lane.b32.xlu2 %v917_v44, %s987_s26  ;;  %v919_v34 = vpop.eup %918 }
 0xccd   :  { %v676_v60 = vmul.f32 0.5, %v919_v34 }
 0xccf   :  { %v678_v45 = vadd.f32 0.5, %v676_v60 }
 0xd26   :  { %v697_v46 = vpop.permute.xlu2 %696 }
 0xd27   :  { %v699_v47 = vmul.f32 %v697_v46, %v678_v45 }
 0xd29   :  { %700 = vst.msk [vmem:[#allocation2 + $0x8] sm:$0x30] %vm377_vm4, %v699_v47  ;;  %v702_v48 = vrot.slane %v699_v47, 4 }
 0xd2b   :  { %851 = vmatmul.msk.f32.vlgmr.msra.gmra.mxu0 %vm140_vm2, %v702_v48  ;;  %852 = vmatmul.msk.f32.vlgmr.msra.gmra.mxu1 %vm140_vm2, %v702_v48 }
 0xda8   :  { %v742_v49 = vpop.f32.mrf.mxu1  ;;  %v722_v53 = vpop.f32.mrf.mxu0 }
 0xda9   :  { %v748_v50 = vrot.slane %v742_v49, 2  ;;  %v747_v54 = vrot.slane %v722_v53, 2 }
 0xdab   :  { %v752_v51 = vadd.f32 %v748_v50, %v1271_v20  ;;  %v751_v56 = vadd.f32 %v747_v54, %v1278_v33 }
 0xdad   :  { %920 = vtanh.f32 %v752_v51  ;;  %v753_v57 = vmul.f32 0.5, %v751_v56  ;;  %v754_v2 = vmul.f32 0.5, %v752_v51 }
 0xdaf   :  { %922 = vtanh.f32 %v753_v57 }
 0xdb3   :  { %v921_v52 = vpop.eup %920 }
 0xdb4   :  { %767 = vrot.lane.b32.xlu0 %v921_v52, %s987_s26 }
 0xdb5   :  { %v923_v58 = vpop.eup %922 }
 0xdb6   :  { %v757_v59 = vmul.f32 0.5, %v923_v58 }
 0xdb8   :  { %v759_v61 = vadd.f32 0.5, %v757_v59 }
 0xdba   :  { %v765_v5 = vmul.f32 %v763_v3, %v759_v61 }
 0xe26   :  { %v768_v62 = vpop.permute.xlu0 %767 }
 0xe27   :  { %v770_v63 = vmul.f32 %v768_v62, %v759_v61 }
 0xe29   :  { %772 = vrot.lane.b32.xlu1 %v770_v63, %s987_s26 }
 0xe9b   :  { %v773_v20 = vpop.permute.xlu1 %772 }
 0xe9c   :  { %v775_v0 = vadd.f32 %v773_v20, %v765_v5 }
 0xe9e   :  { %924 = vtanh.f32 %v775_v0 }
 0xe9f   :  { %926 = vtanh.f32 %v754_v2 }
 0xea4   :  { %v925_v1 = vpop.eup %924 }
 0xea5   :  { %778 = vrot.lane.b32.xlu2 %v925_v1, %s987_s26  ;;  %v927_v33 = vpop.eup %926 }
 0xea6   :  { %v758_v4 = vmul.f32 0.5, %v927_v33 }
 0xea8   :  { %v760_v7 = vadd.f32 0.5, %v758_v4 }
 0xeff   :  { %v779_v11 = vpop.permute.xlu2 %778 }
 0xf00   :  { %v781_v17 = vmul.f32 %v779_v11, %v760_v7 }
 0xf02   :  { %782 = vst.msk [vmem:[#allocation2 + $0x8] sm:$0xc0] %vm460_vm5, %v781_v17 }
 0xf09   :  { %v784_v18 = vld [vmem:[#allocation2 + $0x8] sm:$0xff] }
 0xf0a   :  { %854 = vmatmul.msk.f32.gmra.mxu2 %vm140_vm2, %v784_v18 }
 0xf8d   :  { %v823_v14 = vpop.f32.mrf.mxu2 }
 0xf8e   :  { %v824_v19 = vadd.f32 %v1323_v13, %v823_v14 }
 0xf90   :  { %828 = vst.msk [vmem:[%s1355_s6 + $0x8] sm:$0xff] %vm826_vm6, %v824_v19 }
 0xf91   :  { %833 = vsyncpa [#allocation4], 1 }
 0xf92   :  { %834 = vsyncpa [#allocation6], 1 }

</bundles_post_ra>
